<compile_context>
chip_gen: v6e
topology: v6e:2x2x1
jax: 0.10.0
libtpu: 0.0.40
codegen_flags: <defaults>
</compile_context>

<pallas_src>
import functools

import jax
import jax.numpy as jnp
from jax.experimental import pallas as pl
from jax.experimental.pallas import tpu as pltpu

_LN_EPS = 1e-5  # PyTorch nn.LayerNorm default


def decoder_kernel(x_ref, w1_ref, w23_ref, w4_ref, vecs_ref, o_ref):
    """vecs_ref: [10, W] f32 -- rows 0-2: b1,b2,b3; 3-5: g1,g2,g3; 6-8: be1,be2,be3;
    row 9: b4 (zero-padded to W).  W = max(hidden_dim, output_dim)."""
    vecs = vecs_ref[...]               # tiny; load once
    hid = w1_ref.shape[1]
    out_dim = o_ref.shape[-1]
    mm_dtype = w1_ref.dtype            # matmul operand dtype (f32 or bf16)

    def block(h, w, i):
        # Linear (MXU, f32 accumulate) + bias (f32)
        y = jnp.dot(h, w, preferred_element_type=jnp.float32) + vecs[i:i + 1, :hid]
        # LayerNorm in f32 (rsqrt -> EUP slot, lane reductions -> XLU slot)
        mu = jnp.mean(y, axis=-1, keepdims=True)
        var = jnp.mean((y - mu) * (y - mu), axis=-1, keepdims=True)
        y = (y - mu) * jax.lax.rsqrt(var + _LN_EPS) * vecs[3 + i:4 + i, :hid] \
            + vecs[6 + i:7 + i, :hid]
        # ReLU
        return jnp.maximum(y, 0.0)

    h = block(x_ref[...], w1_ref[...], 0)
    h = block(h.astype(mm_dtype), w23_ref[0], 1)
    h = block(h.astype(mm_dtype), w23_ref[1], 2)

    out = jnp.dot(h.astype(mm_dtype), w4_ref[...],
                  preferred_element_type=jnp.float32) + vecs[9:10, :out_dim]
    o_ref[...] = out.astype(o_ref.dtype)


def decoder_forward(x, params, *, num_batch_blocks=1, compute_dtype=jnp.float32):
    """x: [B, latent_dim] -> [B, output_dim] (float32).

    num_batch_blocks: grid steps over the batch (1 = collapsed grid; 2 lets the
                      parallel axis shard across v7x's two TensorCores).
    compute_dtype:    dtype of matmul operands (f32, or bf16 for MXU peak on
                      v6e/v7x). Accumulation and LayerNorm stay f32.
    """
    B, latent_dim = x.shape
    hidden_dim = params["w1"].shape[1]
    output_dim = params["w4"].shape[1]
    assert B % num_batch_blocks == 0, "batch must be divisible by num_batch_blocks"
    tile_b = B // num_batch_blocks

    cd = compute_dtype
    x_c = x.astype(cd)
    w1 = params["w1"].astype(cd)
    w23 = jnp.stack([params["w2"], params["w3"]], axis=0).astype(cd)  # [2, H, H]
    w4 = params["w4"].astype(cd)

    # Pack the ten small per-layer vectors into one [10, W] f32 array.
    W = max(hidden_dim, output_dim)

    def pad_to(v):
        return jnp.pad(v, ((0, 0), (0, W - v.shape[1])))

    vecs = jnp.concatenate(
        [pad_to(params[k]) for k in
         ("b1", "b2", "b3", "g1", "g2", "g3", "be1", "be2", "be3", "b4")],
        axis=0,
    ).astype(jnp.float32)

    def full_spec(a):
        # Whole array resident in VMEM; same block for every grid step.
        return pl.BlockSpec(a.shape, lambda i, n=a.ndim: (0,) * n)

    grid_spec = pl.GridSpec(
        grid=(num_batch_blocks,),
        in_specs=[pl.BlockSpec((tile_b, latent_dim), lambda i: (i, 0)),
                  full_spec(w1), full_spec(w23), full_spec(w4), full_spec(vecs)],
        out_specs=pl.BlockSpec((tile_b, output_dim), lambda i: (i, 0)),
    )

    # TODO(synk): if hidden_dim ever grows to the thousands, tile w23/w4 along
    # K/N instead of keeping them fully resident (v7x has only 64 MiB VMEM).
    return pl.pallas_call(
        decoder_kernel,
        out_shape=jax.ShapeDtypeStruct((B, output_dim), jnp.float32),
        grid_spec=grid_spec,
        compiler_params=pltpu.CompilerParams(
            dimension_semantics=("parallel",),
        ),
    )(x_c, w1, w23, w4, vecs)


def init_params(key, latent_dim, hidden_dim, output_dim):
    """Deterministic synthetic parameters. Linear weights stored as [in, out]."""
    ks = jax.random.split(key, 4)

    def lin(k, fan_in, fan_out):
        bound = 1.0 / jnp.sqrt(fan_in)
        kw, kb = jax.random.split(k)
        w = jax.random.uniform(kw, (fan_in, fan_out), jnp.float32, -bound, bound)
        b = jax.random.uniform(kb, (1, fan_out), jnp.float32, -bound, bound)
        return w, b

    w1, b1 = lin(ks[0], latent_dim, hidden_dim)
    w2, b2 = lin(ks[1], hidden_dim, hidden_dim)
    w3, b3 = lin(ks[2], hidden_dim, hidden_dim)
    w4, b4 = lin(ks[3], hidden_dim, output_dim)

    # LayerNorm affine params (PyTorch default init: gamma=1, beta=0).
    ones = jnp.ones((1, hidden_dim), jnp.float32)
    zeros = jnp.zeros((1, hidden_dim), jnp.float32)
    return dict(
        w1=w1, b1=b1, g1=ones, be1=zeros,
        w2=w2, b2=b2, g2=ones, be2=zeros,
        w3=w3, b3=b3, g3=ones, be3=zeros,
        w4=w4, b4=b4,
    )


def decoder_reference(x, p, compute_dtype=jnp.float32):
    """Pure-JAX reference with the same operand-dtype casting as the kernel."""
    cd = compute_dtype

    def ln(h, g, b):
        mu = jnp.mean(h, -1, keepdims=True)
        var = jnp.mean((h - mu) ** 2, -1, keepdims=True)
        return (h - mu) * jax.lax.rsqrt(var + _LN_EPS) * g + b

    def lin(h, w, b):
        return jnp.dot(h.astype(cd), w.astype(cd),
                       preferred_element_type=jnp.float32) + b

    h = jnp.maximum(ln(lin(x, p["w1"], p["b1"]), p["g1"], p["be1"]), 0.0)
    h = jnp.maximum(ln(lin(h, p["w2"], p["b2"]), p["g2"], p["be2"]), 0.0)
    h = jnp.maximum(ln(lin(h, p["w3"], p["b3"]), p["g3"], p["be3"]), 0.0)
    return lin(h, p["w4"], p["b4"])


if __name__ == "__main__":
    latent_dim, hidden_dim, output_dim = 16, 32, 16
    batch = 64

    key = jax.random.PRNGKey(0)
    kx, kp = jax.random.split(key)
    x = jax.random.normal(kx, (batch, latent_dim), jnp.float32)
    params = init_params(kp, latent_dim, hidden_dim, output_dim)

    # 1) f32 operands, collapsed grid (primary configuration).
    fwd = jax.jit(functools.partial(decoder_forward,
                                    num_batch_blocks=1, compute_dtype=jnp.float32))
    out = jax.block_until_ready(fwd(x, params))
    ref = decoder_reference(x, params, jnp.float32)
    assert out.shape == (batch, output_dim)
    assert jnp.allclose(out, ref, atol=1e-4, rtol=1e-4), "f32 kernel mismatch"

    # 2) f32 operands, 2 batch blocks (megacore sharding shape on v7x).
    fwd2 = jax.jit(functools.partial(decoder_forward,
                                     num_batch_blocks=2, compute_dtype=jnp.float32))
    out2 = jax.block_until_ready(fwd2(x, params))
    assert jnp.allclose(out2, ref, atol=1e-4, rtol=1e-4), "2-block kernel mismatch"

    # 3) bf16 matmul operands (v6e/v7x MXU), f32 accumulate + f32 LayerNorm.
    fwd_bf = jax.jit(functools.partial(decoder_forward,
                                       num_batch_blocks=1, compute_dtype=jnp.bfloat16))
    out_bf = jax.block_until_ready(fwd_bf(x, params))
    ref_bf = decoder_reference(x, params, jnp.bfloat16)
    assert jnp.allclose(out_bf, ref_bf, atol=2e-3, rtol=2e-3), "bf16 kernel mismatch"

    print("KERNEL_OK")
</pallas_src>

<mosaic_0001>
module attributes {stable_mosaic.version = 11 : i64} {
  func.func @decoder_kernel(%arg0: i32, %arg1: memref<64x16xf32, #tpu.memory_space<vmem>>, %arg2: memref<16x32xf32, #tpu.memory_space<vmem>>, %arg3: memref<2x32x32xf32, #tpu.memory_space<vmem>>, %arg4: memref<32x16xf32, #tpu.memory_space<vmem>>, %arg5: memref<10x32xf32, #tpu.memory_space<vmem>>, %arg6: memref<64x16xf32, #tpu.memory_space<vmem>>) attributes {dimension_semantics = [#tpu.dimension_semantics<parallel>], iteration_bounds = array<i64: 1>, scalar_prefetch = 0 : i64, scratch_operands = 0 : i64, tpu.core_type = #tpu.core_type<tc>, window_params = [{transform_indices = @transform_0, window_bounds = array<i64: 64, 16>}, {pipeline_mode = #tpu.pipeline_mode<synchronous>, transform_indices = @transform_1, window_bounds = array<i64: 16, 32>}, {pipeline_mode = #tpu.pipeline_mode<synchronous>, transform_indices = @transform_2, window_bounds = array<i64: 2, 32, 32>}, {pipeline_mode = #tpu.pipeline_mode<synchronous>, transform_indices = @transform_3, window_bounds = array<i64: 32, 16>}, {pipeline_mode = #tpu.pipeline_mode<synchronous>, transform_indices = @transform_4, window_bounds = array<i64: 10, 32>}, {transform_indices = @transform_5, window_bounds = array<i64: 64, 16>}]} {
    %c0 = arith.constant 0 : index
    %c0_0 = arith.constant 0 : index
    %0 = vector.load %arg5[%c0, %c0_0] : memref<10x32xf32, #tpu.memory_space<vmem>>, vector<10x32xf32>
    %c0_1 = arith.constant 0 : index
    %c0_2 = arith.constant 0 : index
    %1 = vector.load %arg1[%c0_1, %c0_2] : memref<64x16xf32, #tpu.memory_space<vmem>>, vector<64x16xf32>
    %c0_3 = arith.constant 0 : index
    %c0_4 = arith.constant 0 : index
    %2 = vector.load %arg2[%c0_3, %c0_4] : memref<16x32xf32, #tpu.memory_space<vmem>>, vector<16x32xf32>
    %cst = arith.constant dense<0.000000e+00> : vector<64x32xf32>
    %3 = tpu.matmul %1, %2, %cst {dimension_numbers = #tpu.dot_dimension_numbers<[1], [0], [0], [1], [0, 0, 1, 1], [], []>} : vector<64x16xf32>, vector<16x32xf32>, vector<64x32xf32> -> vector<64x32xf32>
    %4 = vector.extract_strided_slice %0 {offsets = [0, 0], sizes = [1, 32], strides = [1, 1]} : vector<10x32xf32> to vector<1x32xf32>
    %5 = vector.broadcast %4 : vector<1x32xf32> to vector<64x32xf32>
    %6 = arith.addf %3, %5 : vector<64x32xf32>
    %cst_5 = arith.constant dense<0.000000e+00> : vector<64xf32>
    %7 = vector.multi_reduction <add>, %6, %cst_5 [1] : vector<64x32xf32> to vector<64xf32>
    %8 = vector.shape_cast %7 : vector<64xf32> to vector<64x1xf32>
    %cst_6 = arith.constant 3.200000e+01 : f32
    %9 = vector.broadcast %cst_6 : f32 to vector<64x1xf32>
    %10 = arith.divf %8, %9 : vector<64x1xf32>
    %11 = vector.broadcast %10 : vector<64x1xf32> to vector<64x32xf32>
    %12 = arith.subf %6, %11 : vector<64x32xf32>
    %13 = vector.broadcast %10 : vector<64x1xf32> to vector<64x32xf32>
    %14 = arith.subf %6, %13 : vector<64x32xf32>
    %15 = arith.mulf %12, %14 : vector<64x32xf32>
    %cst_7 = arith.constant dense<0.000000e+00> : vector<64xf32>
    %16 = vector.multi_reduction <add>, %15, %cst_7 [1] : vector<64x32xf32> to vector<64xf32>
    %17 = vector.shape_cast %16 : vector<64xf32> to vector<64x1xf32>
    %cst_8 = arith.constant 3.200000e+01 : f32
    %18 = vector.broadcast %cst_8 : f32 to vector<64x1xf32>
    %19 = arith.divf %17, %18 : vector<64x1xf32>
    %20 = vector.broadcast %10 : vector<64x1xf32> to vector<64x32xf32>
    %21 = arith.subf %6, %20 : vector<64x32xf32>
    %cst_9 = arith.constant 9.99999974E-6 : f32
    %22 = vector.broadcast %cst_9 : f32 to vector<64x1xf32>
    %23 = arith.addf %19, %22 : vector<64x1xf32>
    %24 = math.rsqrt %23 : vector<64x1xf32>
    %25 = vector.broadcast %24 : vector<64x1xf32> to vector<64x32xf32>
    %26 = arith.mulf %21, %25 : vector<64x32xf32>
    %27 = vector.extract_strided_slice %0 {offsets = [3, 0], sizes = [1, 32], strides = [1, 1]} : vector<10x32xf32> to vector<1x32xf32>
    %28 = vector.broadcast %27 : vector<1x32xf32> to vector<64x32xf32>
    %29 = arith.mulf %26, %28 : vector<64x32xf32>
    %30 = vector.extract_strided_slice %0 {offsets = [6, 0], sizes = [1, 32], strides = [1, 1]} : vector<10x32xf32> to vector<1x32xf32>
    %31 = vector.broadcast %30 : vector<1x32xf32> to vector<64x32xf32>
    %32 = arith.addf %29, %31 : vector<64x32xf32>
    %cst_10 = arith.constant 0.000000e+00 : f32
    %33 = vector.broadcast %cst_10 : f32 to vector<64x32xf32>
    %34 = arith.maximumf %32, %33 : vector<64x32xf32>
    %c0_11 = arith.constant 0 : index
    %c0_12 = arith.constant 0 : index
    %c0_13 = arith.constant 0 : index
    %35 = vector.load %arg3[%c0_11, %c0_12, %c0_13] : memref<2x32x32xf32, #tpu.memory_space<vmem>>, vector<1x32x32xf32>
    %36 = vector.shape_cast %35 : vector<1x32x32xf32> to vector<32x32xf32>
    %cst_14 = arith.constant dense<0.000000e+00> : vector<64x32xf32>
    %37 = tpu.matmul %34, %36, %cst_14 {dimension_numbers = #tpu.dot_dimension_numbers<[1], [0], [0], [1], [0, 0, 1, 1], [], []>} : vector<64x32xf32>, vector<32x32xf32>, vector<64x32xf32> -> vector<64x32xf32>
    %38 = vector.extract_strided_slice %0 {offsets = [1, 0], sizes = [1, 32], strides = [1, 1]} : vector<10x32xf32> to vector<1x32xf32>
    %39 = vector.broadcast %38 : vector<1x32xf32> to vector<64x32xf32>
    %40 = arith.addf %37, %39 : vector<64x32xf32>
    %cst_15 = arith.constant dense<0.000000e+00> : vector<64xf32>
    %41 = vector.multi_reduction <add>, %40, %cst_15 [1] : vector<64x32xf32> to vector<64xf32>
    %42 = vector.shape_cast %41 : vector<64xf32> to vector<64x1xf32>
    %cst_16 = arith.constant 3.200000e+01 : f32
    %43 = vector.broadcast %cst_16 : f32 to vector<64x1xf32>
    %44 = arith.divf %42, %43 : vector<64x1xf32>
    %45 = vector.broadcast %44 : vector<64x1xf32> to vector<64x32xf32>
    %46 = arith.subf %40, %45 : vector<64x32xf32>
    %47 = vector.broadcast %44 : vector<64x1xf32> to vector<64x32xf32>
    %48 = arith.subf %40, %47 : vector<64x32xf32>
    %49 = arith.mulf %46, %48 : vector<64x32xf32>
    %cst_17 = arith.constant dense<0.000000e+00> : vector<64xf32>
    %50 = vector.multi_reduction <add>, %49, %cst_17 [1] : vector<64x32xf32> to vector<64xf32>
    %51 = vector.shape_cast %50 : vector<64xf32> to vector<64x1xf32>
    %cst_18 = arith.constant 3.200000e+01 : f32
    %52 = vector.broadcast %cst_18 : f32 to vector<64x1xf32>
    %53 = arith.divf %51, %52 : vector<64x1xf32>
    %54 = vector.broadcast %44 : vector<64x1xf32> to vector<64x32xf32>
    %55 = arith.subf %40, %54 : vector<64x32xf32>
    %cst_19 = arith.constant 9.99999974E-6 : f32
    %56 = vector.broadcast %cst_19 : f32 to vector<64x1xf32>
    %57 = arith.addf %53, %56 : vector<64x1xf32>
    %58 = math.rsqrt %57 : vector<64x1xf32>
    %59 = vector.broadcast %58 : vector<64x1xf32> to vector<64x32xf32>
    %60 = arith.mulf %55, %59 : vector<64x32xf32>
    %61 = vector.extract_strided_slice %0 {offsets = [4, 0], sizes = [1, 32], strides = [1, 1]} : vector<10x32xf32> to vector<1x32xf32>
    %62 = vector.broadcast %61 : vector<1x32xf32> to vector<64x32xf32>
    %63 = arith.mulf %60, %62 : vector<64x32xf32>
    %64 = vector.extract_strided_slice %0 {offsets = [7, 0], sizes = [1, 32], strides = [1, 1]} : vector<10x32xf32> to vector<1x32xf32>
    %65 = vector.broadcast %64 : vector<1x32xf32> to vector<64x32xf32>
    %66 = arith.addf %63, %65 : vector<64x32xf32>
    %cst_20 = arith.constant 0.000000e+00 : f32
    %67 = vector.broadcast %cst_20 : f32 to vector<64x32xf32>
    %68 = arith.maximumf %66, %67 : vector<64x32xf32>
    %c1 = arith.constant 1 : index
    %c0_21 = arith.constant 0 : index
    %c0_22 = arith.constant 0 : index
    %69 = vector.load %arg3[%c1, %c0_21, %c0_22] : memref<2x32x32xf32, #tpu.memory_space<vmem>>, vector<1x32x32xf32>
    %70 = vector.shape_cast %69 : vector<1x32x32xf32> to vector<32x32xf32>
    %cst_23 = arith.constant dense<0.000000e+00> : vector<64x32xf32>
    %71 = tpu.matmul %68, %70, %cst_23 {dimension_numbers = #tpu.dot_dimension_numbers<[1], [0], [0], [1], [0, 0, 1, 1], [], []>} : vector<64x32xf32>, vector<32x32xf32>, vector<64x32xf32> -> vector<64x32xf32>
    %72 = vector.extract_strided_slice %0 {offsets = [2, 0], sizes = [1, 32], strides = [1, 1]} : vector<10x32xf32> to vector<1x32xf32>
    %73 = vector.broadcast %72 : vector<1x32xf32> to vector<64x32xf32>
    %74 = arith.addf %71, %73 : vector<64x32xf32>
    %cst_24 = arith.constant dense<0.000000e+00> : vector<64xf32>
    %75 = vector.multi_reduction <add>, %74, %cst_24 [1] : vector<64x32xf32> to vector<64xf32>
    %76 = vector.shape_cast %75 : vector<64xf32> to vector<64x1xf32>
    %cst_25 = arith.constant 3.200000e+01 : f32
    %77 = vector.broadcast %cst_25 : f32 to vector<64x1xf32>
    %78 = arith.divf %76, %77 : vector<64x1xf32>
    %79 = vector.broadcast %78 : vector<64x1xf32> to vector<64x32xf32>
    %80 = arith.subf %74, %79 : vector<64x32xf32>
    %81 = vector.broadcast %78 : vector<64x1xf32> to vector<64x32xf32>
    %82 = arith.subf %74, %81 : vector<64x32xf32>
    %83 = arith.mulf %80, %82 : vector<64x32xf32>
    %cst_26 = arith.constant dense<0.000000e+00> : vector<64xf32>
    %84 = vector.multi_reduction <add>, %83, %cst_26 [1] : vector<64x32xf32> to vector<64xf32>
    %85 = vector.shape_cast %84 : vector<64xf32> to vector<64x1xf32>
    %cst_27 = arith.constant 3.200000e+01 : f32
    %86 = vector.broadcast %cst_27 : f32 to vector<64x1xf32>
    %87 = arith.divf %85, %86 : vector<64x1xf32>
    %88 = vector.broadcast %78 : vector<64x1xf32> to vector<64x32xf32>
    %89 = arith.subf %74, %88 : vector<64x32xf32>
    %cst_28 = arith.constant 9.99999974E-6 : f32
    %90 = vector.broadcast %cst_28 : f32 to vector<64x1xf32>
    %91 = arith.addf %87, %90 : vector<64x1xf32>
    %92 = math.rsqrt %91 : vector<64x1xf32>
    %93 = vector.broadcast %92 : vector<64x1xf32> to vector<64x32xf32>
    %94 = arith.mulf %89, %93 : vector<64x32xf32>
    %95 = vector.extract_strided_slice %0 {offsets = [5, 0], sizes = [1, 32], strides = [1, 1]} : vector<10x32xf32> to vector<1x32xf32>
    %96 = vector.broadcast %95 : vector<1x32xf32> to vector<64x32xf32>
    %97 = arith.mulf %94, %96 : vector<64x32xf32>
    %98 = vector.extract_strided_slice %0 {offsets = [8, 0], sizes = [1, 32], strides = [1, 1]} : vector<10x32xf32> to vector<1x32xf32>
    %99 = vector.broadcast %98 : vector<1x32xf32> to vector<64x32xf32>
    %100 = arith.addf %97, %99 : vector<64x32xf32>
    %cst_29 = arith.constant 0.000000e+00 : f32
    %101 = vector.broadcast %cst_29 : f32 to vector<64x32xf32>
    %102 = arith.maximumf %100, %101 : vector<64x32xf32>
    %c0_30 = arith.constant 0 : index
    %c0_31 = arith.constant 0 : index
    %103 = vector.load %arg4[%c0_30, %c0_31] : memref<32x16xf32, #tpu.memory_space<vmem>>, vector<32x16xf32>
    %cst_32 = arith.constant dense<0.000000e+00> : vector<64x16xf32>
    %104 = tpu.matmul %102, %103, %cst_32 {dimension_numbers = #tpu.dot_dimension_numbers<[1], [0], [0], [1], [0, 0, 1, 1], [], []>} : vector<64x32xf32>, vector<32x16xf32>, vector<64x16xf32> -> vector<64x16xf32>
    %105 = vector.extract_strided_slice %0 {offsets = [9, 0], sizes = [1, 16], strides = [1, 1]} : vector<10x32xf32> to vector<1x16xf32>
    %106 = vector.broadcast %105 : vector<1x16xf32> to vector<64x16xf32>
    %107 = arith.addf %104, %106 : vector<64x16xf32>
    %c0_33 = arith.constant 0 : index
    %c0_34 = arith.constant 0 : index
    %108 = vector.load %arg6[%c0_33, %c0_34] : memref<64x16xf32, #tpu.memory_space<vmem>>, vector<64x16xf32>
    tpu.vector_store %arg6[%c0_33, %c0_34], %107 {strides = array<i32>} : memref<64x16xf32, #tpu.memory_space<vmem>>, vector<64x16xf32>,
    return
  }
  func.func @transform_0(%arg0: i32) -> (i32, i32) {
    %c0_i32 = arith.constant 0 : i32
    %c0_i32_0 = arith.constant 0 : i32
    return %arg0, %c0_i32 : i32, i32
  }
  func.func @transform_1(%arg0: i32) -> (i32, i32) {
    %c0_i32 = arith.constant 0 : i32
    %c0_i32_0 = arith.constant 0 : i32
    %c0_i32_1 = arith.constant 0 : i32
    return %c0_i32, %c0_i32_0 : i32, i32
  }
  func.func @transform_2(%arg0: i32) -> (i32, i32, i32) {
    %c0_i32 = arith.constant 0 : i32
    %c0_i32_0 = arith.constant 0 : i32
    %c0_i32_1 = arith.constant 0 : i32
    %c0_i32_2 = arith.constant 0 : i32
    return %c0_i32, %c0_i32_0, %c0_i32_1 : i32, i32, i32
  }
  func.func @transform_3(%arg0: i32) -> (i32, i32) {
    %c0_i32 = arith.constant 0 : i32
    %c0_i32_0 = arith.constant 0 : i32
    %c0_i32_1 = arith.constant 0 : i32
    return %c0_i32, %c0_i32_0 : i32, i32
  }
  func.func @transform_4(%arg0: i32) -> (i32, i32) {
    %c0_i32 = arith.constant 0 : i32
    %c0_i32_0 = arith.constant 0 : i32
    %c0_i32_1 = arith.constant 0 : i32
    return %c0_i32, %c0_i32_0 : i32, i32
  }
  func.func @transform_5(%arg0: i32) -> (i32, i32) {
    %c0_i32 = arith.constant 0 : i32
    %c0_i32_0 = arith.constant 0 : i32
    return %arg0, %c0_i32 : i32, i32
  }
}

</mosaic_0001>

<bundles_post_ra>
// kernel: decoder_forward.1
= control target key start
LH: loop header
LB: loop body
LE: loop exit
PB: predicated region body
PF: predicated region fallthrough
CT: control target
= control target key end

     0   :  { %vm36_vm0 = vcmask 130048   ;;  %v32_v10 = vlaneseq  ;;  %vm166_vm1 = vcmask 261120   ;;  %s1568_s1 = inlined_call_operand.vmem [shape: f32[16,32], index: 1, kind: input, shape index: {}]   ;;  %s1569_s0 = inlined_call_operand.vmem [shape: f32[64,16], index: 0, kind: input, shape index: {}]   ;;  %s1570_s4 = inlined_call_operand.vmem [shape: f32[10,32], index: 4, kind: input, shape index: {}]   ;;  %s1571_s2 = inlined_call_operand.vmem [shape: f32[2,32,32], index: 2, kind: input, shape index: {}]   ;;  %s1572_s3 = inlined_call_operand.vmem [shape: f32[32,16], index: 3, kind: input, shape index: {}]   ;;  %s1573_s5 = inlined_call_operand.vmem [shape: f32[64,16], index: 5, kind: output, shape index: {}]  }
   0x1   :  { %v31_v0 = vld [vmem:[%s1568_s1 + $0x8] sm:$0xff]  ;;  %v30_v1 = vld [vmem:[%s1568_s1] sm:$0xff]  ;;  %v24_v4 = vld [vmem:[%s1569_s0 + $0x10] sm:$0xff] }
   0x2   :  { %v22_v2 = vld [vmem:[%s1569_s0] sm:$0xff]  ;;  %1082 = vmatprep.subr.mxu0 %v31_v0  ;;  %v23_v3 = vld [vmem:[%s1569_s0 + $0x8] sm:$0xff]  ;;  %v25_v5 = vld [vmem:[%s1569_s0 + $0x18] sm:$0xff]  ;;  %v1274_v11 = vshrl.u32 %v32_v10, 7 }
   0x3   :  { %1086 = vmatprep.mubr.msk.f32.mxu0 %vm36_vm0, %v22_v2  ;;  %1083 = vmatpush3.msra.mxu0 %v31_v0  ;;  %v26_v6 = vld [vmem:[%s1569_s0 + $0x20] sm:$0xff]  ;;  %v27_v7 = vld [vmem:[%s1569_s0 + $0x28] sm:$0xff]  ;;  %v28_v8 = vld [vmem:[%s1569_s0 + $0x30] sm:$0xff] }
   0x4   :  { %1084 = vmatprep.subr.mxu0 %v30_v1  ;;  %v29_v9 = vld [vmem:[%s1569_s0 + $0x38] sm:$0xff]  ;;  %v34_v12 = vsub.s32 0, %v1274_v11  ;;  %v1280_v13 = vld [vmem:[%s1570_s4] sm:$0xff] }
   0x5   :  { %1085 = vmatpush3.msra.mxu0 %v30_v1 }
   0x6   :  { %1087 = vmatmul.mubr.msk.f32.vlgmr.msra.gmra.mxu0 %vm36_vm0, %v23_v3  ;;  %v35_v15 = vrot.slane %v1280_v13, %v34_v12 }
   0x7   :  { %1089 = vmatprep.mubr.msk.f32.mxu0 %vm36_vm0, %v24_v4 }
   0xa   :  { %1090 = vmatmul.mubr.msk.f32.gmra.mxu0 %vm36_vm0, %v25_v5 }
   0xb   :  { %1092 = vmatprep.mubr.msk.f32.mxu0 %vm36_vm0, %v26_v6 }
   0xe   :  { %1093 = vmatmul.mubr.msk.f32.gmra.mxu0 %vm36_vm0, %v27_v7 }
   0xf   :  { %1095 = vmatprep.mubr.msk.f32.mxu0 %vm36_vm0, %v28_v8 }
  0x12   :  { %1096 = vmatmul.mubr.msk.f32.gmra.mxu0 %vm36_vm0, %v29_v9 }
  0xc6   :  { %v1088_v14 = vpop.f32.mrf.mxu0 }
  0xc7   :  { %v133_v19 = vadd.f32 %v1088_v14, %v35_v15 }
  0xc8   :  { %v127_v16 = vpop.f32.mrf.mxu0 }
  0xc9   :  { %v128_v17 = vadd.f32 %v127_v16, %v35_v15  ;;  %v170_v26 = vsel %vm166_vm1, %v133_v19, 0.0 }
  0xca   :  { %v1091_v18 = vpop.f32.mrf.mxu0 }
  0xcb   :  { %v167_v20 = vsel %vm166_vm1, %v128_v17, 0.0  ;;  %v143_v24 = vadd.f32 %v1091_v18, %v35_v15  ;;  %v307_v18 = vld [vmem:[%s1571_s2 + $0x18] sm:$0xff] }
  0xcc   :  { %v137_v21 = vpop.f32.mrf.mxu0  ;;  %168 = vadd.xlane.f32.xlu0 %v167_v20  ;;  %1098 = vmatprep.subr.mxu1 %v307_v18  ;;  %v305_v20 = vld [vmem:[%s1571_s2 + $0x8] sm:$0xff] }
  0xcd   :  { %v138_v22 = vadd.f32 %v137_v21, %v35_v15  ;;  %v176_v31 = vsel %vm166_vm1, %v143_v24, 0.0  ;;  %1099 = vmatpush3.msra.mxu1 %v307_v18  ;;  %v304_v21 = vld [vmem:[%s1571_s2] sm:$0xff] }
  0xce   :  { %v1094_v23 = vpop.f32.mrf.mxu0 }
  0xcf   :  { %v173_v25 = vsel %vm166_vm1, %v138_v22, 0.0  ;;  %v153_v30 = vadd.f32 %v1094_v23, %v35_v15 }
  0xd0   :  { %v147_v27 = vpop.f32.mrf.mxu0  ;;  %174 = vadd.xlane.f32.xlu1 %v173_v25  ;;  %171 = vadd.xlane.f32.xlu0 %v170_v26 }
  0xd1   :  { %v148_v28 = vadd.f32 %v147_v27, %v35_v15  ;;  %v182_v36 = vsel %vm166_vm1, %v153_v30, 0.0 }
  0xd2   :  { %v1097_v29 = vpop.f32.mrf.mxu0 }
  0xd3   :  { %v179_v32 = vsel %vm166_vm1, %v148_v28, 0.0  ;;  %v163_v35 = vadd.f32 %v1097_v29, %v35_v15 }
  0xd4   :  { %v157_v33 = vpop.f32.mrf.mxu0  ;;  %177 = vadd.xlane.f32.xlu1 %v176_v31  ;;  %180 = vadd.xlane.f32.xlu0 %v179_v32 }
  0xd5   :  { %v158_v34 = vadd.f32 %v157_v33, %v35_v15  ;;  %v188_v38 = vsel %vm166_vm1, %v163_v35, 0.0 }
  0xd7   :  { %v185_v37 = vsel %vm166_vm1, %v158_v34, 0.0 }
  0xd8   :  { %183 = vadd.xlane.f32.xlu1 %v182_v36  ;;  %186 = vadd.xlane.f32.xlu0 %v185_v37 }
  0xdc   :  { %189 = vadd.xlane.f32.xlu1 %v188_v38 }
 0x155   :  { %v169_v39 = vpop.xlane.xlu0 %168 }
 0x156   :  { %v192_v40 = vmul.f32 0.03125, %v169_v39 }
 0x158   :  { %v1293_v41 = vsub.f32 %v128_v17, %v192_v40 }
 0x159   :  { %v175_v42 = vpop.xlane.xlu1 %174  ;;  %v172_v43 = vpop.xlane.xlu0 %171 }
 0x15a   :  { %v194_v44 = vmul.f32 0.03125, %v175_v42  ;;  %v193_v45 = vmul.f32 0.03125, %v172_v43  ;;  %v208_v46 = vmul.f32 %v1293_v41, %v1293_v41  ;;  %v274_v42 = vsub.s32 3, %v1274_v11 }
 0x15c   :  { %v1297_v47 = vsub.f32 %v138_v22, %v194_v44  ;;  %v1299_v48 = vsub.f32 %v133_v19, %v193_v45  ;;  %v216_v49 = vsel %vm166_vm1, %v208_v46, 0.0  ;;  %v306_v19 = vld [vmem:[%s1571_s2 + $0x10] sm:$0xff]  ;;  %v286_v45 = vsub.s32 6, %v1274_v11 }
 0x15d   :  { %v178_v50 = vpop.xlane.xlu1 %177  ;;  %217 = vadd.xlane.f32.xlu0 %v216_v49  ;;  %v181_v51 = vpop.xlane.xlu0 %180  ;;  %1100 = vmatprep.subr.mxu1 %v306_v19 }
 0x15e   :  { %v195_v52 = vmul.f32 0.03125, %v178_v50  ;;  %v196_v53 = vmul.f32 0.03125, %v181_v51  ;;  %v210_v54 = vmul.f32 %v1297_v47, %v1297_v47  ;;  %v209_v55 = vmul.f32 %v1299_v48, %v1299_v48  ;;  %1101 = vmatpush3.msra.mxu1 %v306_v19 }
 0x15f   :  { %1102 = vmatprep.subr.mxu1 %v305_v20  ;;  %v275_v50 = vrot.slane %v1280_v13, %v274_v42 }
 0x160   :  { %v1306_v56 = vsub.f32 %v143_v24, %v195_v52  ;;  %v1308_v57 = vsub.f32 %v148_v28, %v196_v53  ;;  %v222_v58 = vsel %vm166_vm1, %v210_v54, 0.0  ;;  %v219_v59 = vsel %vm166_vm1, %v209_v55, 0.0  ;;  %1103 = vmatpush3.msra.mxu1 %v305_v20 }
 0x161   :  { %v184_v60 = vpop.xlane.xlu1 %183  ;;  %223 = vadd.xlane.f32.xlu0 %v222_v58  ;;  %220 = vadd.xlane.f32.xlu1 %v219_v59  ;;  %v187_v61 = vpop.xlane.xlu0 %186  ;;  %v287_v54 = vrot.slane %v1280_v13, %v286_v45 }
 0x162   :  { %v197_v62 = vmul.f32 0.03125, %v184_v60  ;;  %v198_v63 = vmul.f32 0.03125, %v187_v61  ;;  %v211_v0 = vmul.f32 %v1306_v56, %v1306_v56  ;;  %v212_v1 = vmul.f32 %v1308_v57, %v1308_v57  ;;  %1104 = vmatprep.subr.mxu1 %v304_v21 }
 0x163   :  { %1105 = vmatpush3.msra.mxu1 %v304_v21 }
 0x164   :  { %v1316_v2 = vsub.f32 %v153_v30, %v197_v62  ;;  %v1318_v3 = vsub.f32 %v158_v34, %v198_v63  ;;  %v225_v4 = vsel %vm166_vm1, %v211_v0, 0.0  ;;  %v228_v5 = vsel %vm166_vm1, %v212_v1, 0.0 }
 0x165   :  { %v190_v6 = vpop.xlane.xlu1 %189  ;;  %226 = vadd.xlane.f32.xlu1 %v225_v4  ;;  %229 = vadd.xlane.f32.xlu0 %v228_v5 }
 0x166   :  { %v199_v7 = vmul.f32 0.03125, %v190_v6  ;;  %v213_v8 = vmul.f32 %v1316_v2, %v1316_v2  ;;  %v214_v9 = vmul.f32 %v1318_v3, %v1318_v3 }
 0x168   :  { %v1326_v10 = vsub.f32 %v163_v35, %v199_v7  ;;  %v231_v14 = vsel %vm166_vm1, %v213_v8, 0.0  ;;  %v234_v15 = vsel %vm166_vm1, %v214_v9, 0.0 }
 0x169   :  { %232 = vadd.xlane.f32.xlu1 %v231_v14  ;;  %235 = vadd.xlane.f32.xlu0 %v234_v15 }
 0x16a   :  { %v215_v16 = vmul.f32 %v1326_v10, %v1326_v10 }
 0x16c   :  { %v237_v17 = vsel %vm166_vm1, %v215_v16, 0.0 }
 0x16d   :  { %238 = vadd.xlane.f32.xlu1 %v237_v17 }
 0x1e6   :  { %v218_v22 = vpop.xlane.xlu0 %217 }
 0x1e7   :  { %v240_v23 = vmul.f32 0.03125, %v218_v22 }
 0x1e9   :  { %v248_v24 = vadd.f32 1e-05, %v240_v23 }
 0x1ea   :  { %v221_v25 = vpop.xlane.xlu1 %220  ;;  %v224_v26 = vpop.xlane.xlu0 %223 }
 0x1eb   :  { %1158 = vrsqrt.f32 %v248_v24  ;;  %v241_v27 = vmul.f32 0.03125, %v221_v25  ;;  %v242_v28 = vmul.f32 0.03125, %v224_v26 }
 0x1ed   :  { %v249_v29 = vadd.f32 1e-05, %v241_v27  ;;  %v250_v30 = vadd.f32 1e-05, %v242_v28 }
 0x1ee   :  { %v227_v31 = vpop.xlane.xlu1 %226  ;;  %v230_v32 = vpop.xlane.xlu0 %229 }
 0x1ef   :  { %1160 = vrsqrt.f32 %v249_v29  ;;  %v243_v33 = vmul.f32 0.03125, %v227_v31  ;;  %v244_v34 = vmul.f32 0.03125, %v230_v32 }
 0x1f0   :  { %1162 = vrsqrt.f32 %v250_v30  ;;  %v310_v30 = vsub.s32 1, %v1274_v11 }
 0x1f1   :  { %v251_v35 = vadd.f32 1e-05, %v243_v33  ;;  %v252_v36 = vadd.f32 1e-05, %v244_v34 }
 0x1f2   :  { %v233_v37 = vpop.xlane.xlu1 %232  ;;  %v236_v38 = vpop.xlane.xlu0 %235 }
 0x1f3   :  { %1164 = vrsqrt.f32 %v251_v35  ;;  %v245_v39 = vmul.f32 0.03125, %v233_v37  ;;  %v246_v40 = vmul.f32 0.03125, %v236_v38 }
 0x1f4   :  { %1166 = vrsqrt.f32 %v252_v36 }
 0x1f5   :  { %v253_v43 = vadd.f32 1e-05, %v245_v39  ;;  %v254_v44 = vadd.f32 1e-05, %v246_v40 }
 0x1f6   :  { %v239_v46 = vpop.xlane.xlu1 %238 }
 0x1f7   :  { %1168 = vrsqrt.f32 %v253_v43  ;;  %v247_v49 = vmul.f32 0.03125, %v239_v46 }
 0x1f8   :  { %v1159_v51 = vpop.eup %1158  ;;  %1170 = vrsqrt.f32 %v254_v44 }
 0x1f9   :  { %v255_v52 = vadd.f32 1e-05, %v247_v49  ;;  %v264_v53 = vmul.f32 %v1159_v51, %v1293_v41 }
 0x1fb   :  { %1172 = vrsqrt.f32 %v255_v52  ;;  %v276_v55 = vmul.f32 %v275_v50, %v264_v53 }
 0x1fc   :  { %v1161_v58 = vpop.eup %1160 }
 0x1fd   :  { %v1163_v59 = vpop.eup %1162  ;;  %v288_v60 = vadd.f32 %v287_v54, %v276_v55  ;;  %v265_v61 = vmul.f32 %v1161_v58, %v1299_v48 }
 0x1fe   :  { %v266_v62 = vmul.f32 %v1163_v59, %v1297_v47 }
 0x1ff   :  { %v296_v63 = vmax.f32 %v288_v60, 0.0  ;;  %v277_v0 = vmul.f32 %v275_v50, %v265_v61 }
 0x200   :  { %v1165_v1 = vpop.eup %1164  ;;  %v278_v4 = vmul.f32 %v275_v50, %v266_v62 }
 0x201   :  { %v1167_v5 = vpop.eup %1166  ;;  %1106 = vmatprep.mubr.msk.f32.mxu1 %vm166_vm1, %v296_v63  ;;  %v289_v6 = vadd.f32 %v287_v54, %v277_v0  ;;  %v267_v41 = vmul.f32 %v1165_v1, %v1306_v56 }
 0x202   :  { %v290_v7 = vadd.f32 %v287_v54, %v278_v4  ;;  %v268_v8 = vmul.f32 %v1167_v5, %v1308_v57 }
 0x203   :  { %v297_v9 = vmax.f32 %v289_v6, 0.0  ;;  %v279_v14 = vmul.f32 %v275_v50, %v267_v41 }
 0x204   :  { %v1169_v15 = vpop.eup %1168  ;;  %v298_v16 = vmax.f32 %v290_v7, 0.0  ;;  %v280_v48 = vmul.f32 %v275_v50, %v268_v8 }
 0x205   :  { %v1171_v17 = vpop.eup %1170  ;;  %1107 = vmatmul.mubr.msk.f32.vlgmr.msra.gmra.mxu1 %vm166_vm1, %v297_v9  ;;  %v291_v47 = vadd.f32 %v287_v54, %v279_v14  ;;  %v269_v18 = vmul.f32 %v1169_v15, %v1316_v2 }
 0x206   :  { %1109 = vmatprep.mubr.msk.f32.mxu1 %vm166_vm1, %v298_v16  ;;  %v292_v19 = vadd.f32 %v287_v54, %v280_v48  ;;  %v270_v20 = vmul.f32 %v1171_v17, %v1318_v3 }
 0x207   :  { %v299_v56 = vmax.f32 %v291_v47, 0.0  ;;  %v281_v21 = vmul.f32 %v275_v50, %v269_v18 }
 0x208   :  { %v1173_v22 = vpop.eup %1172  ;;  %v300_v57 = vmax.f32 %v292_v19, 0.0  ;;  %v282_v23 = vmul.f32 %v275_v50, %v270_v20 }
 0x209   :  { %1110 = vmatmul.mubr.msk.f32.gmra.mxu1 %vm166_vm1, %v299_v56  ;;  %v293_v24 = vadd.f32 %v287_v54, %v281_v21  ;;  %v271_v25 = vmul.f32 %v1173_v22, %v1326_v10  ;;  %v311_v10 = vrot.slane %v1280_v13, %v310_v30 }
 0x20a   :  { %1112 = vmatprep.mubr.msk.f32.mxu1 %vm166_vm1, %v300_v57  ;;  %v294_v26 = vadd.f32 %v287_v54, %v282_v23 }
 0x20b   :  { %v301_v27 = vmax.f32 %v293_v24, 0.0  ;;  %v283_v2 = vmul.f32 %v275_v50, %v271_v25 }
 0x20c   :  { %v302_v28 = vmax.f32 %v294_v26, 0.0 }
 0x20d   :  { %1113 = vmatmul.mubr.msk.f32.gmra.mxu1 %vm166_vm1, %v301_v27  ;;  %v295_v29 = vadd.f32 %v287_v54, %v283_v2 }
 0x20e   :  { %1115 = vmatprep.mubr.msk.f32.mxu1 %vm166_vm1, %v302_v28 }
 0x20f   :  { %v303_v3 = vmax.f32 %v295_v29, 0.0 }
 0x211   :  { %1116 = vmatmul.mubr.msk.f32.gmra.mxu1 %vm166_vm1, %v303_v3 }
 0x2c5   :  { %v1108_v31 = vpop.f32.mrf.mxu1 }
 0x2c6   :  { %v408_v32 = vadd.f32 %v1108_v31, %v311_v10 }
 0x2c7   :  { %v402_v33 = vpop.f32.mrf.mxu1 }
 0x2c8   :  { %v403_v34 = vadd.f32 %v402_v33, %v311_v10  ;;  %v444_v35 = vsel %vm166_vm1, %v408_v32, 0.0 }
 0x2c9   :  { %445 = vadd.xlane.f32.xlu1 %v444_v35  ;;  %v1111_v36 = vpop.f32.mrf.mxu1  ;;  %v1019_v35 = vld [vmem:[%s1571_s2 + $0x38] sm:$0xff] }
 0x2ca   :  { %v418_v37 = vadd.f32 %v1111_v36, %v311_v10  ;;  %v441_v38 = vsel %vm166_vm1, %v403_v34, 0.0  ;;  %v1018_v36 = vld [vmem:[%s1571_s2 + $0x30] sm:$0xff]  ;;  %1118 = vmatprep.subr.mxu0 %v1019_v35 }
 0x2cb   :  { %442 = vadd.xlane.f32.xlu0 %v441_v38  ;;  %v412_v39 = vpop.f32.mrf.mxu1  ;;  %1119 = vmatpush3.msra.mxu0 %v1019_v35  ;;  %v1016_v38 = vld [vmem:[%s1571_s2 + $0x20] sm:$0xff] }
 0x2cc   :  { %v413_v40 = vadd.f32 %v412_v39, %v311_v10  ;;  %v450_v42 = vsel %vm166_vm1, %v418_v37, 0.0  ;;  %1120 = vmatprep.subr.mxu0 %v1018_v36 }
 0x2cd   :  { %451 = vadd.xlane.f32.xlu1 %v450_v42  ;;  %v1114_v43 = vpop.f32.mrf.mxu1  ;;  %1121 = vmatpush3.msra.mxu0 %v1018_v36 }
 0x2ce   :  { %v428_v44 = vadd.f32 %v1114_v43, %v311_v10  ;;  %v447_v45 = vsel %vm166_vm1, %v413_v40, 0.0 }
 0x2cf   :  { %448 = vadd.xlane.f32.xlu0 %v447_v45  ;;  %v422_v46 = vpop.f32.mrf.mxu1 }
 0x2d0   :  { %v423_v49 = vadd.f32 %v422_v46, %v311_v10  ;;  %v456_v50 = vsel %vm166_vm1, %v428_v44, 0.0 }
 0x2d1   :  { %457 = vadd.xlane.f32.xlu1 %v456_v50  ;;  %v1117_v51 = vpop.f32.mrf.mxu1 }
 0x2d2   :  { %v438_v52 = vadd.f32 %v1117_v51, %v311_v10  ;;  %v453_v53 = vsel %vm166_vm1, %v423_v49, 0.0 }
 0x2d3   :  { %454 = vadd.xlane.f32.xlu0 %v453_v53  ;;  %v432_v54 = vpop.f32.mrf.mxu1 }
 0x2d4   :  { %v433_v55 = vadd.f32 %v432_v54, %v311_v10  ;;  %v462_v58 = vsel %vm166_vm1, %v438_v52, 0.0 }
 0x2d5   :  { %463 = vadd.xlane.f32.xlu1 %v462_v58 }
 0x2d6   :  { %v459_v59 = vsel %vm166_vm1, %v433_v55, 0.0 }
 0x2d7   :  { %460 = vadd.xlane.f32.xlu0 %v459_v59 }
 0x352   :  { %v446_v60 = vpop.xlane.xlu1 %445 }
 0x353   :  { %v466_v61 = vmul.f32 0.03125, %v446_v60 }
 0x354   :  { %v443_v62 = vpop.xlane.xlu0 %442 }
 0x355   :  { %v1377_v63 = vsub.f32 %v408_v32, %v466_v61  ;;  %v465_v0 = vmul.f32 0.03125, %v443_v62  ;;  %v547_v62 = vsub.s32 4, %v1274_v11 }
 0x356   :  { %v452_v1 = vpop.xlane.xlu1 %451 }
 0x357   :  { %v1379_v4 = vsub.f32 %v403_v34, %v465_v0  ;;  %v468_v5 = vmul.f32 0.03125, %v452_v1  ;;  %v482_v6 = vmul.f32 %v1377_v63, %v1377_v63 }
 0x358   :  { %v449_v41 = vpop.xlane.xlu0 %448 }
 0x359   :  { %v1383_v7 = vsub.f32 %v418_v37, %v468_v5  ;;  %v467_v8 = vmul.f32 0.03125, %v449_v41  ;;  %v492_v9 = vsel %vm166_vm1, %v482_v6, 0.0  ;;  %v481_v14 = vmul.f32 %v1379_v4, %v1379_v4  ;;  %v1017_v37 = vld [vmem:[%s1571_s2 + $0x28] sm:$0xff] }
 0x35a   :  { %v458_v15 = vpop.xlane.xlu1 %457  ;;  %493 = vadd.xlane.f32.xlu1 %v492_v9  ;;  %1122 = vmatprep.subr.mxu0 %v1017_v37  ;;  %v548_v9 = vrot.slane %v1280_v13, %v547_v62 }
 0x35b   :  { %v1388_v16 = vsub.f32 %v413_v40, %v467_v8  ;;  %v470_v48 = vmul.f32 0.03125, %v458_v15  ;;  %v489_v17 = vsel %vm166_vm1, %v481_v14, 0.0  ;;  %v484_v47 = vmul.f32 %v1383_v7, %v1383_v7  ;;  %1123 = vmatpush3.msra.mxu0 %v1017_v37 }
 0x35c   :  { %490 = vadd.xlane.f32.xlu0 %v489_v17  ;;  %v455_v18 = vpop.xlane.xlu0 %454  ;;  %1124 = vmatprep.subr.mxu0 %v1016_v38  ;;  %v559_v8 = vsub.s32 7, %v1274_v11 }
 0x35d   :  { %v1393_v19 = vsub.f32 %v428_v44, %v470_v48  ;;  %v469_v20 = vmul.f32 0.03125, %v455_v18  ;;  %v498_v56 = vsel %vm166_vm1, %v484_v47, 0.0  ;;  %v483_v21 = vmul.f32 %v1388_v16, %v1388_v16  ;;  %1125 = vmatpush3.msra.mxu0 %v1016_v38 }
 0x35e   :  { %499 = vadd.xlane.f32.xlu1 %v498_v56  ;;  %v464_v22 = vpop.xlane.xlu1 %463  ;;  %v560_v47 = vrot.slane %v1280_v13, %v559_v8 }
 0x35f   :  { %v1398_v57 = vsub.f32 %v423_v49, %v469_v20  ;;  %v472_v23 = vmul.f32 0.03125, %v464_v22  ;;  %v495_v24 = vsel %vm166_vm1, %v483_v21, 0.0  ;;  %v486_v25 = vmul.f32 %v1393_v19, %v1393_v19 }
 0x360   :  { %496 = vadd.xlane.f32.xlu0 %v495_v24  ;;  %v461_v26 = vpop.xlane.xlu0 %460 }
 0x361   :  { %v1403_v27 = vsub.f32 %v438_v52, %v472_v23  ;;  %v471_v2 = vmul.f32 0.03125, %v461_v26  ;;  %v504_v28 = vsel %vm166_vm1, %v486_v25, 0.0  ;;  %v485_v29 = vmul.f32 %v1398_v57, %v1398_v57 }
 0x362   :  { %505 = vadd.xlane.f32.xlu1 %v504_v28 }
 0x363   :  { %v1408_v3 = vsub.f32 %v433_v55, %v471_v2  ;;  %v501_v10 = vsel %vm166_vm1, %v485_v29, 0.0  ;;  %v488_v31 = vmul.f32 %v1403_v27, %v1403_v27 }
 0x364   :  { %502 = vadd.xlane.f32.xlu0 %v501_v10 }
 0x365   :  { %v510_v32 = vsel %vm166_vm1, %v488_v31, 0.0  ;;  %v487_v33 = vmul.f32 %v1408_v3, %v1408_v3 }
 0x366   :  { %511 = vadd.xlane.f32.xlu1 %v510_v32 }
 0x367   :  { %v507_v34 = vsel %vm166_vm1, %v487_v33, 0.0 }
 0x368   :  { %508 = vadd.xlane.f32.xlu0 %v507_v34 }
 0x3e3   :  { %v494_v39 = vpop.xlane.xlu1 %493 }
 0x3e4   :  { %v514_v40 = vmul.f32 0.03125, %v494_v39 }
 0x3e5   :  { %v491_v42 = vpop.xlane.xlu0 %490 }
 0x3e6   :  { %v522_v43 = vadd.f32 1e-05, %v514_v40  ;;  %v513_v44 = vmul.f32 0.03125, %v491_v42 }
 0x3e7   :  { %v500_v45 = vpop.xlane.xlu1 %499 }
 0x3e8   :  { %1174 = vrsqrt.f32 %v522_v43  ;;  %v521_v46 = vadd.f32 1e-05, %v513_v44  ;;  %v516_v49 = vmul.f32 0.03125, %v500_v45 }
 0x3e9   :  { %v497_v50 = vpop.xlane.xlu0 %496 }
 0x3ea   :  { %1176 = vrsqrt.f32 %v521_v46  ;;  %v524_v51 = vadd.f32 1e-05, %v516_v49  ;;  %v515_v52 = vmul.f32 0.03125, %v497_v50 }
 0x3eb   :  { %v506_v53 = vpop.xlane.xlu1 %505 }
 0x3ec   :  { %1178 = vrsqrt.f32 %v524_v51  ;;  %v523_v54 = vadd.f32 1e-05, %v515_v52  ;;  %v518_v55 = vmul.f32 0.03125, %v506_v53 }
 0x3ed   :  { %v503_v58 = vpop.xlane.xlu0 %502 }
 0x3ee   :  { %1180 = vrsqrt.f32 %v523_v54  ;;  %v526_v59 = vadd.f32 1e-05, %v518_v55  ;;  %v517_v60 = vmul.f32 0.03125, %v503_v58 }
 0x3ef   :  { %v512_v61 = vpop.xlane.xlu1 %511 }
 0x3f0   :  { %1182 = vrsqrt.f32 %v526_v59  ;;  %v525_v0 = vadd.f32 1e-05, %v517_v60  ;;  %v520_v1 = vmul.f32 0.03125, %v512_v61 }
 0x3f1   :  { %v509_v5 = vpop.xlane.xlu0 %508 }
 0x3f2   :  { %1184 = vrsqrt.f32 %v525_v0  ;;  %v528_v6 = vadd.f32 1e-05, %v520_v1  ;;  %v519_v41 = vmul.f32 0.03125, %v509_v5 }
 0x3f4   :  { %1186 = vrsqrt.f32 %v528_v6  ;;  %v527_v14 = vadd.f32 1e-05, %v519_v41 }
 0x3f5   :  { %v1175_v15 = vpop.eup %1174 }
 0x3f6   :  { %v538_v48 = vmul.f32 %v1175_v15, %v1377_v63  ;;  %1188 = vrsqrt.f32 %v527_v14 }
 0x3f7   :  { %v1177_v17 = vpop.eup %1176 }
 0x3f8   :  { %v550_v18 = vmul.f32 %v548_v9, %v538_v48  ;;  %v537_v20 = vmul.f32 %v1177_v17, %v1379_v4 }
 0x3f9   :  { %v1179_v56 = vpop.eup %1178 }
 0x3fa   :  { %v549_v21 = vmul.f32 %v548_v9, %v537_v20  ;;  %v540_v22 = vmul.f32 %v1179_v56, %v1383_v7  ;;  %v562_v24 = vadd.f32 %v560_v47, %v550_v18 }
 0x3fb   :  { %v1181_v23 = vpop.eup %1180 }
 0x3fc   :  { %v561_v25 = vadd.f32 %v560_v47, %v549_v21  ;;  %v539_v26 = vmul.f32 %v1181_v23, %v1388_v16  ;;  %v552_v2 = vmul.f32 %v548_v9, %v540_v22  ;;  %v570_v32 = vmax.f32 %v562_v24, 0.0 }
 0x3fd   :  { %v1183_v28 = vpop.eup %1182 }
 0x3fe   :  { %v569_v29 = vmax.f32 %v561_v25, 0.0  ;;  %v551_v63 = vmul.f32 %v548_v9, %v539_v26  ;;  %v542_v10 = vmul.f32 %v1183_v28, %v1393_v19  ;;  %v564_v33 = vadd.f32 %v560_v47, %v552_v2 }
 0x3ff   :  { %v1185_v31 = vpop.eup %1184 }
 0x400   :  { %1126 = vmatprep.mubr.msk.f32.mxu0 %vm166_vm1, %v569_v29  ;;  %v563_v4 = vadd.f32 %v560_v47, %v551_v63  ;;  %v541_v34 = vmul.f32 %v1185_v31, %v1398_v57  ;;  %v554_v7 = vmul.f32 %v548_v9, %v542_v10  ;;  %v572_v39 = vmax.f32 %v564_v33, 0.0 }
 0x401   :  { %v1187_v35 = vpop.eup %1186  ;;  %1127 = vmatmul.mubr.msk.f32.vlgmr.msra.gmra.mxu0 %vm166_vm1, %v570_v32 }
 0x402   :  { %v571_v36 = vmax.f32 %v563_v4, 0.0  ;;  %v553_v16 = vmul.f32 %v548_v9, %v541_v34  ;;  %v544_v37 = vmul.f32 %v1187_v35, %v1403_v27  ;;  %v566_v40 = vadd.f32 %v560_v47, %v554_v7 }
 0x403   :  { %v1189_v38 = vpop.eup %1188 }
 0x404   :  { %1129 = vmatprep.mubr.msk.f32.mxu0 %vm166_vm1, %v571_v36  ;;  %v565_v19 = vadd.f32 %v560_v47, %v553_v16  ;;  %v543_v42 = vmul.f32 %v1189_v38, %v1408_v3  ;;  %v556_v43 = vmul.f32 %v548_v9, %v544_v37  ;;  %v574_v45 = vmax.f32 %v566_v40, 0.0 }
 0x405   :  { %1130 = vmatmul.mubr.msk.f32.gmra.mxu0 %vm166_vm1, %v572_v39  ;;  %v584_v3 = vsub.s32 2, %v1274_v11 }
 0x406   :  { %v573_v57 = vmax.f32 %v565_v19, 0.0  ;;  %v555_v44 = vmul.f32 %v548_v9, %v543_v42  ;;  %v568_v46 = vadd.f32 %v560_v47, %v556_v43 }
 0x407   :  { %v585_v51 = vrot.slane %v1280_v13, %v584_v3 }
 0x408   :  { %1132 = vmatprep.mubr.msk.f32.mxu0 %vm166_vm1, %v573_v57  ;;  %v567_v49 = vadd.f32 %v560_v47, %v555_v44  ;;  %v576_v50 = vmax.f32 %v568_v46, 0.0 }
 0x409   :  { %1133 = vmatmul.mubr.msk.f32.gmra.mxu0 %vm166_vm1, %v574_v45 }
 0x40a   :  { %v575_v27 = vmax.f32 %v567_v49, 0.0 }
 0x40c   :  { %1135 = vmatprep.mubr.msk.f32.mxu0 %vm166_vm1, %v575_v27 }
 0x40d   :  { %1136 = vmatmul.mubr.msk.f32.gmra.mxu0 %vm166_vm1, %v576_v50 }
 0x4c1   :  { %v1128_v52 = vpop.f32.mrf.mxu0 }
 0x4c2   :  { %v682_v53 = vadd.f32 %v1128_v52, %v585_v51 }
 0x4c3   :  { %v676_v54 = vpop.f32.mrf.mxu0 }
 0x4c4   :  { %v677_v55 = vadd.f32 %v676_v54, %v585_v51  ;;  %v718_v58 = vsel %vm166_vm1, %v682_v53, 0.0 }
 0x4c5   :  { %719 = vadd.xlane.f32.xlu1 %v718_v58  ;;  %v1131_v59 = vpop.f32.mrf.mxu0  ;;  %v854_v58 = vld [vmem:[%s1572_s3 + $0x18] sm:$0xff] }
 0x4c6   :  { %v692_v60 = vadd.f32 %v1131_v59, %v585_v51  ;;  %v715_v61 = vsel %vm166_vm1, %v677_v55, 0.0  ;;  %v853_v59 = vld [vmem:[%s1572_s3 + $0x10] sm:$0xff]  ;;  %1138 = vmatprep.subr.mxu1 %v854_v58 }
 0x4c7   :  { %716 = vadd.xlane.f32.xlu0 %v715_v61  ;;  %v686_v62 = vpop.f32.mrf.mxu0  ;;  %1139 = vmatpush3.msra.mxu1 %v854_v58  ;;  %v851_v61 = vld [vmem:[%s1572_s3] sm:$0xff] }
 0x4c8   :  { %v687_v0 = vadd.f32 %v686_v62, %v585_v51  ;;  %v724_v1 = vsel %vm166_vm1, %v692_v60, 0.0  ;;  %1140 = vmatprep.subr.mxu1 %v853_v59 }
 0x4c9   :  { %725 = vadd.xlane.f32.xlu1 %v724_v1  ;;  %v1134_v5 = vpop.f32.mrf.mxu0  ;;  %1141 = vmatpush3.msra.mxu1 %v853_v59 }
 0x4ca   :  { %v702_v6 = vadd.f32 %v1134_v5, %v585_v51  ;;  %v721_v41 = vsel %vm166_vm1, %v687_v0, 0.0 }
 0x4cb   :  { %722 = vadd.xlane.f32.xlu0 %v721_v41  ;;  %v696_v8 = vpop.f32.mrf.mxu0 }
 0x4cc   :  { %v697_v9 = vadd.f32 %v696_v8, %v585_v51  ;;  %v730_v14 = vsel %vm166_vm1, %v702_v6, 0.0 }
 0x4cd   :  { %731 = vadd.xlane.f32.xlu1 %v730_v14  ;;  %v1137_v15 = vpop.f32.mrf.mxu0 }
 0x4ce   :  { %v712_v48 = vadd.f32 %v1137_v15, %v585_v51  ;;  %v727_v17 = vsel %vm166_vm1, %v697_v9, 0.0 }
 0x4cf   :  { %728 = vadd.xlane.f32.xlu0 %v727_v17  ;;  %v706_v47 = vpop.f32.mrf.mxu0 }
 0x4d0   :  { %v707_v18 = vadd.f32 %v706_v47, %v585_v51  ;;  %v736_v20 = vsel %vm166_vm1, %v712_v48, 0.0 }
 0x4d1   :  { %737 = vadd.xlane.f32.xlu1 %v736_v20 }
 0x4d2   :  { %v733_v56 = vsel %vm166_vm1, %v707_v18, 0.0 }
 0x4d3   :  { %734 = vadd.xlane.f32.xlu0 %v733_v56 }
 0x54e   :  { %v720_v21 = vpop.xlane.xlu1 %719 }
 0x54f   :  { %v740_v22 = vmul.f32 0.03125, %v720_v21 }
 0x550   :  { %v717_v23 = vpop.xlane.xlu0 %716 }
 0x551   :  { %v1459_v24 = vsub.f32 %v682_v53, %v740_v22  ;;  %v739_v25 = vmul.f32 0.03125, %v717_v23  ;;  %v821_v23 = vsub.s32 5, %v1274_v11 }
 0x552   :  { %v726_v26 = vpop.xlane.xlu1 %725 }
 0x553   :  { %v1461_v2 = vsub.f32 %v677_v55, %v739_v25  ;;  %v742_v28 = vmul.f32 0.03125, %v726_v26  ;;  %v756_v29 = vmul.f32 %v1459_v24, %v1459_v24 }
 0x554   :  { %v723_v63 = vpop.xlane.xlu0 %722 }
 0x555   :  { %v1465_v10 = vsub.f32 %v692_v60, %v742_v28  ;;  %v741_v31 = vmul.f32 0.03125, %v723_v63  ;;  %v766_v32 = vsel %vm166_vm1, %v756_v29, 0.0  ;;  %v755_v33 = vmul.f32 %v1461_v2, %v1461_v2  ;;  %v852_v60 = vld [vmem:[%s1572_s3 + $0x8] sm:$0xff] }
 0x556   :  { %v732_v4 = vpop.xlane.xlu1 %731  ;;  %767 = vadd.xlane.f32.xlu1 %v766_v32  ;;  %1142 = vmatprep.subr.mxu1 %v852_v60  ;;  %v822_v32 = vrot.slane %v1280_v13, %v821_v23 }
 0x557   :  { %v1470_v34 = vsub.f32 %v687_v0, %v741_v31  ;;  %v744_v7 = vmul.f32 0.03125, %v732_v4  ;;  %v763_v35 = vsel %vm166_vm1, %v755_v33, 0.0  ;;  %v758_v36 = vmul.f32 %v1465_v10, %v1465_v10  ;;  %1143 = vmatpush3.msra.mxu1 %v852_v60  ;;  %v21_v31 = vld [vmem:[%s1570_s4 + $0x8] sm:$0x3] }
 0x558   :  { %764 = vadd.xlane.f32.xlu0 %v763_v35  ;;  %v729_v16 = vpop.xlane.xlu0 %728  ;;  %1144 = vmatprep.subr.mxu1 %v851_v61 }
 0x559   :  { %v1475_v37 = vsub.f32 %v702_v6, %v744_v7  ;;  %v743_v38 = vmul.f32 0.03125, %v729_v16  ;;  %v772_v39 = vsel %vm166_vm1, %v758_v36, 0.0  ;;  %v757_v40 = vmul.f32 %v1470_v34, %v1470_v34  ;;  %1145 = vmatpush3.msra.mxu1 %v851_v61 }
 0x55a   :  { %773 = vadd.xlane.f32.xlu1 %v772_v39  ;;  %v738_v19 = vpop.xlane.xlu1 %737  ;;  %v834_v36 = vrot.slane %v21_v31, %v34_v12 }
 0x55b   :  { %v1480_v42 = vsub.f32 %v697_v9, %v743_v38  ;;  %v746_v43 = vmul.f32 0.03125, %v738_v19  ;;  %v769_v57 = vsel %vm166_vm1, %v757_v40, 0.0  ;;  %v760_v44 = vmul.f32 %v1475_v37, %v1475_v37 }
 0x55c   :  { %770 = vadd.xlane.f32.xlu0 %v769_v57  ;;  %v735_v45 = vpop.xlane.xlu0 %734 }
 0x55d   :  { %v1485_v46 = vsub.f32 %v712_v48, %v746_v43  ;;  %v745_v49 = vmul.f32 0.03125, %v735_v45  ;;  %v778_v27 = vsel %vm166_vm1, %v760_v44, 0.0  ;;  %v759_v50 = vmul.f32 %v1480_v42, %v1480_v42 }
 0x55e   :  { %779 = vadd.xlane.f32.xlu1 %v778_v27 }
 0x55f   :  { %v1490_v3 = vsub.f32 %v707_v18, %v745_v49  ;;  %v775_v51 = vsel %vm166_vm1, %v759_v50, 0.0  ;;  %v762_v52 = vmul.f32 %v1485_v46, %v1485_v46 }
 0x560   :  { %776 = vadd.xlane.f32.xlu0 %v775_v51 }
 0x561   :  { %v784_v53 = vsel %vm166_vm1, %v762_v52, 0.0  ;;  %v761_v54 = vmul.f32 %v1490_v3, %v1490_v3 }
 0x562   :  { %785 = vadd.xlane.f32.xlu1 %v784_v53 }
 0x563   :  { %v781_v55 = vsel %vm166_vm1, %v761_v54, 0.0 }
 0x564   :  { %782 = vadd.xlane.f32.xlu0 %v781_v55 }
 0x5df   :  { %v768_v62 = vpop.xlane.xlu1 %767 }
 0x5e0   :  { %v788_v0 = vmul.f32 0.03125, %v768_v62 }
 0x5e1   :  { %v765_v1 = vpop.xlane.xlu0 %764 }
 0x5e2   :  { %v796_v5 = vadd.f32 1e-05, %v788_v0  ;;  %v787_v6 = vmul.f32 0.03125, %v765_v1 }
 0x5e3   :  { %v774_v41 = vpop.xlane.xlu1 %773 }
 0x5e4   :  { %1190 = vrsqrt.f32 %v796_v5  ;;  %v795_v8 = vadd.f32 1e-05, %v787_v6  ;;  %v790_v9 = vmul.f32 0.03125, %v774_v41 }
 0x5e5   :  { %v771_v14 = vpop.xlane.xlu0 %770 }
 0x5e6   :  { %1192 = vrsqrt.f32 %v795_v8  ;;  %v798_v15 = vadd.f32 1e-05, %v790_v9  ;;  %v789_v48 = vmul.f32 0.03125, %v771_v14 }
 0x5e7   :  { %v780_v17 = vpop.xlane.xlu1 %779 }
 0x5e8   :  { %1194 = vrsqrt.f32 %v798_v15  ;;  %v797_v47 = vadd.f32 1e-05, %v789_v48  ;;  %v792_v18 = vmul.f32 0.03125, %v780_v17 }
 0x5e9   :  { %v777_v20 = vpop.xlane.xlu0 %776 }
 0x5ea   :  { %1196 = vrsqrt.f32 %v797_v47  ;;  %v800_v56 = vadd.f32 1e-05, %v792_v18  ;;  %v791_v21 = vmul.f32 0.03125, %v777_v20 }
 0x5eb   :  { %v786_v22 = vpop.xlane.xlu1 %785 }
 0x5ec   :  { %1198 = vrsqrt.f32 %v800_v56  ;;  %v799_v25 = vadd.f32 1e-05, %v791_v21  ;;  %v794_v26 = vmul.f32 0.03125, %v786_v22 }
 0x5ed   :  { %v783_v28 = vpop.xlane.xlu0 %782 }
 0x5ee   :  { %1200 = vrsqrt.f32 %v799_v25  ;;  %v802_v29 = vadd.f32 1e-05, %v794_v26  ;;  %v793_v63 = vmul.f32 0.03125, %v783_v28 }
 0x5f0   :  { %1202 = vrsqrt.f32 %v802_v29  ;;  %v801_v33 = vadd.f32 1e-05, %v793_v63 }
 0x5f1   :  { %v1191_v4 = vpop.eup %1190 }
 0x5f2   :  { %v812_v7 = vmul.f32 %v1191_v4, %v1459_v24  ;;  %1204 = vrsqrt.f32 %v801_v33 }
 0x5f3   :  { %v1193_v35 = vpop.eup %1192 }
 0x5f4   :  { %v824_v16 = vmul.f32 %v822_v32, %v812_v7  ;;  %v811_v38 = vmul.f32 %v1193_v35, %v1461_v2 }
 0x5f5   :  { %v1195_v39 = vpop.eup %1194 }
 0x5f6   :  { %v823_v40 = vmul.f32 %v822_v32, %v811_v38  ;;  %v814_v19 = vmul.f32 %v1195_v39, %v1465_v10  ;;  %v836_v57 = vadd.f32 %v834_v36, %v824_v16 }
 0x5f7   :  { %v1197_v43 = vpop.eup %1196 }
 0x5f8   :  { %v835_v13 = vadd.f32 %v834_v36, %v823_v40  ;;  %v813_v44 = vmul.f32 %v1197_v43, %v1470_v34  ;;  %v826_v45 = vmul.f32 %v822_v32, %v814_v19  ;;  %v844_v12 = vmax.f32 %v836_v57, 0.0 }
 0x5f9   :  { %v1199_v49 = vpop.eup %1198 }
 0x5fa   :  { %v843_v24 = vmax.f32 %v835_v13, 0.0  ;;  %v825_v27 = vmul.f32 %v822_v32, %v813_v44  ;;  %v816_v50 = vmul.f32 %v1199_v49, %v1475_v37  ;;  %v838_v52 = vadd.f32 %v834_v36, %v826_v45 }
 0x5fb   :  { %v1201_v51 = vpop.eup %1200 }
 0x5fc   :  { %1146 = vmatprep.mubr.msk.f32.mxu1 %vm166_vm1, %v843_v24  ;;  %v837_v2 = vadd.f32 %v834_v36, %v825_v27  ;;  %v815_v53 = vmul.f32 %v1201_v51, %v1480_v42  ;;  %v828_v10 = vmul.f32 %v822_v32, %v816_v50  ;;  %v846_v60 = vmax.f32 %v838_v52, 0.0 }
 0x5fd   :  { %v1203_v54 = vpop.eup %1202  ;;  %1147 = vmatmul.mubr.msk.f32.vlgmr.msra.gmra.mxu1 %vm166_vm1, %v844_v12 }
 0x5fe   :  { %v845_v55 = vmax.f32 %v837_v2, 0.0  ;;  %v827_v34 = vmul.f32 %v822_v32, %v815_v53  ;;  %v818_v58 = vmul.f32 %v1203_v54, %v1485_v46  ;;  %v840_v61 = vadd.f32 %v834_v36, %v828_v10 }
 0x5ff   :  { %v1205_v59 = vpop.eup %1204 }
 0x600   :  { %1149 = vmatprep.mubr.msk.f32.mxu1 %vm166_vm1, %v845_v55  ;;  %v839_v37 = vadd.f32 %v834_v36, %v827_v34  ;;  %v817_v62 = vmul.f32 %v1205_v59, %v1490_v3  ;;  %v830_v0 = vmul.f32 %v822_v32, %v818_v58  ;;  %v848_v5 = vmax.f32 %v840_v61, 0.0 }
 0x601   :  { %1150 = vmatmul.mubr.msk.f32.gmra.mxu1 %vm166_vm1, %v846_v60  ;;  %v858_v3 = vrot.slane %v21_v31, %v310_v30 }
 0x602   :  { %v847_v42 = vmax.f32 %v839_v37, 0.0  ;;  %v829_v1 = vmul.f32 %v822_v32, %v817_v62  ;;  %v842_v6 = vadd.f32 %v834_v36, %v830_v0 }
 0x604   :  { %1152 = vmatprep.mubr.msk.f32.mxu1 %vm166_vm1, %v847_v42  ;;  %v841_v41 = vadd.f32 %v834_v36, %v829_v1  ;;  %v850_v8 = vmax.f32 %v842_v6, 0.0 }
 0x605   :  { %1153 = vmatmul.mubr.msk.f32.gmra.mxu1 %vm166_vm1, %v848_v5 }
 0x606   :  { %v849_v46 = vmax.f32 %v841_v41, 0.0 }
 0x608   :  { %1155 = vmatprep.mubr.msk.f32.mxu1 %vm166_vm1, %v849_v46 }
 0x609   :  { %1156 = vmatmul.mubr.msk.f32.gmra.mxu1 %vm166_vm1, %v850_v8 }
 0x6bd   :  { %v1148_v9 = vpop.f32.mrf.mxu1 }
 0x6be   :  { %v955_v14 = vadd.f32 %v1148_v9, %v858_v3 }
 0x6bf   :  { %v949_v15 = vpop.f32.mrf.mxu1 }
 0x6c0   :  { %989 = vst.msk [vmem:[%s1573_s5 + $0x8] sm:$0xff] %vm36_vm0, %v955_v14  ;;  %v950_v48 = vadd.f32 %v949_v15, %v858_v3 }
 0x6c1   :  { %v1151_v17 = vpop.f32.mrf.mxu1 }
 0x6c2   :  { %988 = vst.msk [vmem:[%s1573_s5] sm:$0xff] %vm36_vm0, %v950_v48  ;;  %v965_v47 = vadd.f32 %v1151_v17, %v858_v3 }
 0x6c3   :  { %v959_v18 = vpop.f32.mrf.mxu1 }
 0x6c4   :  { %991 = vst.msk [vmem:[%s1573_s5 + $0x18] sm:$0xff] %vm36_vm0, %v965_v47  ;;  %v960_v11 = vadd.f32 %v959_v18, %v858_v3 }
 0x6c5   :  { %v1154_v30 = vpop.f32.mrf.mxu1 }
 0x6c6   :  { %990 = vst.msk [vmem:[%s1573_s5 + $0x10] sm:$0xff] %vm36_vm0, %v960_v11  ;;  %v975_v20 = vadd.f32 %v1154_v30, %v858_v3 }
 0x6c7   :  { %v969_v56 = vpop.f32.mrf.mxu1 }
 0x6c8   :  { %993 = vst.msk [vmem:[%s1573_s5 + $0x28] sm:$0xff] %vm36_vm0, %v975_v20  ;;  %v970_v21 = vadd.f32 %v969_v56, %v858_v3 }
 0x6c9   :  { %v1157_v22 = vpop.f32.mrf.mxu1 }
 0x6ca   :  { %992 = vst.msk [vmem:[%s1573_s5 + $0x20] sm:$0xff] %vm36_vm0, %v970_v21  ;;  %v985_v23 = vadd.f32 %v1157_v22, %v858_v3 }
 0x6cb   :  { %v979_v25 = vpop.f32.mrf.mxu1 }
 0x6cc   :  { %995 = vst.msk [vmem:[%s1573_s5 + $0x38] sm:$0xff] %vm36_vm0, %v985_v23  ;;  %v980_v26 = vadd.f32 %v979_v25, %v858_v3 }
 0x6ce   :  { %994 = vst.msk [vmem:[%s1573_s5 + $0x30] sm:$0xff] %vm36_vm0, %v980_v26 }

</bundles_post_ra>
